<compile_context>
chip_gen: v6e
topology: v6e:2x2x1
jax: 0.10.0
libtpu: 0.0.40
codegen_flags: <defaults>
</compile_context>

<pallas_src>
from itertools import combinations

import numpy as np
import jax
import jax.numpy as jnp
from jax import lax
from jax.experimental import pallas as pl
from jax.experimental.pallas import tpu as pltpu


_EPS = 1e-12          # matches torch.nn.functional.normalize default
_TILE_T_MAX = 512     # triplet lanes per grid step (multiple of 128)
_LANE = 128
_SUBLANE = 8


def _round_up(x, m):
    return ((x + m - 1) // m) * m


# ----------------------------------------------------------------------------
# Triplet selectors (host-side glue, mirrors the torch reference)
# ----------------------------------------------------------------------------
class TripletSelector:
    """Returns indices of (anchor, positive, negative) as an [T, 3] array."""

    def get_triplets(self, embeddings, labels):
        raise NotImplementedError


class AllTripletSelector(TripletSelector):
    """All valid triplets: label[a] == label[p], a != p, label[n] != label[a]."""

    def get_triplets(self, embeddings, labels):
        labels = np.asarray(labels)
        triplets = []
        for lbl in np.unique(labels):
            pos_idx = np.where(labels == lbl)[0]
            neg_idx = np.where(labels != lbl)[0]
            if len(pos_idx) < 2 or len(neg_idx) == 0:
                continue
            for a, p in combinations(pos_idx, 2):
                for n in neg_idx:
                    triplets.append([a, p, n])
                    triplets.append([p, a, n])
        if not triplets:
            return np.zeros((0, 3), dtype=np.int32)
        return np.asarray(triplets, dtype=np.int32)


# ----------------------------------------------------------------------------
# Kernel 1: L2-normalize all rows once + Gram matrix on the MXU
# ----------------------------------------------------------------------------
def _gram_kernel(e_ref, g_ref):
    e = e_ref[...]
    sumsq = jnp.sum(e * e, axis=1, keepdims=True)
    # x * rsqrt(max(|x|^2, eps^2)) == x / max(||x||, eps)  (torch F.normalize)
    inv = lax.rsqrt(jnp.maximum(sumsq, _EPS * _EPS))
    en = e * inv
    g_ref[...] = jnp.dot(en, en.T, preferred_element_type=jnp.float32)


def _normalized_gram(emb):
    n, d = emb.shape
    n_pad = _round_up(max(n, _SUBLANE), _LANE)   # n_pad is sublane AND lane dim of G
    d_pad = _round_up(max(d, _LANE), _LANE)
    e_pad = jnp.zeros((n_pad, d_pad), jnp.float32).at[:n, :d].set(emb)
    # Batch N is small -> one grid point; zero-padded rows normalize to 0.
    return pl.pallas_call(
        _gram_kernel,
        out_shape=jax.ShapeDtypeStruct((n_pad, n_pad), jnp.float32),
        grid=(1,),
        in_specs=[pl.BlockSpec((n_pad, d_pad), lambda i: (0, 0))],
        out_specs=pl.BlockSpec((n_pad, n_pad), lambda i: (0, 0)),
    )(e_pad)


# ----------------------------------------------------------------------------
# Kernel 2: tiled triplet reduction (hinge loss + distance sums)
# ----------------------------------------------------------------------------
def _make_triplet_kernel(margin):
    def kernel(t_ref, trip_ref, g_ref, loss_ref, dp_ref, dn_ref):
        c = pl.program_id(0)   # core-split axis ("parallel")
        t = pl.program_id(1)   # triplet-tile reduction axis ("arbitrary")

        @pl.when(t == 0)
        def _init():
            loss_ref[...] = jnp.zeros_like(loss_ref)
            dp_ref[...] = jnp.zeros_like(dp_ref)
            dn_ref[...] = jnp.zeros_like(dn_ref)

        n_pad = g_ref.shape[0]
        tile_t = trip_ref.shape[1]

        # Lane-major indices: one row per role, triplets along the lane axis.
        a_idx = trip_ref[0:1, :]                           # [1, tile_t] int32
        p_idx = trip_ref[1:2, :]
        n_idx = trip_ref[2:3, :]

        row = lax.broadcasted_iota(jnp.int32, (n_pad, tile_t), 0)
        oh_a = (row == a_idx).astype(jnp.float32)          # [n_pad, tile_t]
        oh_p = (row == p_idx).astype(jnp.float32)
        oh_n = (row == n_idx).astype(jnp.float32)

        # Column j of g_cols is G[:, a_j] == G[a_j, :] (G symmetric): one MXU
        # matmul gathers an anchor row per triplet.
        g_cols = jnp.dot(g_ref[...], oh_a, preferred_element_type=jnp.float32)
        g_ap = jnp.sum(g_cols * oh_p, axis=0, keepdims=True)   # [1, tile_t] = G[a, p]
        g_an = jnp.sum(g_cols * oh_n, axis=0, keepdims=True)   # [1, tile_t] = G[a, n]

        # For unit vectors: ||a - p||^2 = 2 - 2 <a, p>
        d_p = 2.0 - 2.0 * g_ap
        d_n = 2.0 - 2.0 * g_an
        losses = jnp.maximum(d_p - d_n + margin, 0.0)

        # In-kernel validity mask from the scalar-prefetched true count.
        base = (c * pl.num_programs(1) + t) * tile_t
        lane = lax.broadcasted_iota(jnp.int32, (1, tile_t), 1) + base
        valid = (lane < t_ref[0]).astype(jnp.float32)

        # Broadcast-accumulate the partial sums into the resident out blocks.
        loss_ref[...] += jnp.sum(losses * valid)
        dp_ref[...] += jnp.sum(d_p * valid)
        dn_ref[...] += jnp.sum(d_n * valid)

    return kernel


def _triplet_sums(gram, trip, t_count, margin):
    n_pad = gram.shape[0]
    T = trip.shape[0]

    # Triplet tile size along the lane axis: multiple of 128, capped so the
    # one-hot / gathered-column temporaries (~5 * tile_t * n_pad * 4 B) stay
    # small relative to scoped VMEM.
    work_lanes = (8 << 20) // (5 * 4 * n_pad)
    work_lanes = max(_LANE, (work_lanes // _LANE) * _LANE)
    tile_t = min(_TILE_T_MAX, work_lanes, _round_up(T, _LANE))

    num_tiles = -(-T // tile_t)
    splits = 2 if num_tiles >= 2 else 1          # per-core partials (v7x megacore)
    tiles_per_core = -(-num_tiles // splits)
    t_pad = splits * tiles_per_core * tile_t

    # Pad only the tiny index array; store lane-major [3, t_pad] so every
    # per-triplet intermediate is lane-dense.  Padded lanes masked in-kernel.
    trip_pad = jnp.zeros((3, t_pad), jnp.int32).at[:, :T].set(trip.T)

    out_block = pl.BlockSpec((1, _SUBLANE, _LANE), lambda c, t, tc: (c, 0, 0))
    grid_spec = pltpu.PrefetchScalarGridSpec(
        num_scalar_prefetch=1,
        grid=(splits, tiles_per_core),
        in_specs=[
            pl.BlockSpec((3, tile_t),
                         lambda c, t, tc: (0, c * tiles_per_core + t)),
            pl.BlockSpec((n_pad, n_pad), lambda c, t, tc: (0, 0)),  # G resident
        ],
        out_specs=(out_block, out_block, out_block),
    )
    out_sds = jax.ShapeDtypeStruct((splits, _SUBLANE, _LANE), jnp.float32)

    # Explicit VMEM budget: G (worst-case double-buffered) + index tiles +
    # in-kernel temporaries + margin.  Clamped to a v7x-safe ceiling.
    gram_bytes = n_pad * n_pad * 4
    need = (2 * gram_bytes + 4 * 3 * tile_t * 4
            + 5 * tile_t * n_pad * 4 + (4 << 20))
    vmem_limit = int(min(max(need, 32 << 20), 60 << 20))

    fn = pl.pallas_call(
        _make_triplet_kernel(float(margin)),
        out_shape=(out_sds, out_sds, out_sds),
        grid_spec=grid_spec,
        compiler_params=pltpu.CompilerParams(
            dimension_semantics=("parallel", "arbitrary"),
            vmem_limit_bytes=vmem_limit),
    )
    loss_p, dp_p, dn_p = fn(jnp.asarray([t_count], jnp.int32), trip_pad, gram)
    # Every element of a core's block holds that core's full partial sum.
    return (loss_p[:, 0, 0].sum(), dp_p[:, 0, 0].sum(), dn_p[:, 0, 0].sum())


# ----------------------------------------------------------------------------
# Module-equivalent wrapper
# ----------------------------------------------------------------------------
class OnlineTripletLossPallas:
    def __init__(self, triplet_selector, margin=0.5, reduction="mean"):
        # margin is static per instance (like the nn.Module ctor arg) and is
        # baked into the kernel; distinct margins recompile.
        self.margin = float(margin)
        self.triplet_selector = triplet_selector
        self.reduction = reduction

    def __call__(self, embeddings, target):
        triplets = self.triplet_selector.get_triplets(np.asarray(embeddings),
                                                      np.asarray(target))
        T = int(triplets.shape[0])
        if T == 0:
            return (jnp.array([self.margin], dtype=jnp.float32),
                    jnp.array([0.0], dtype=jnp.float32),
                    jnp.array([0.0], dtype=jnp.float32))

        emb = jnp.asarray(embeddings, dtype=jnp.float32)
        gram = _normalized_gram(emb)                       # Pallas kernel 1
        loss_sum, dp_sum, dn_sum = _triplet_sums(          # Pallas kernel 2
            gram, jnp.asarray(triplets, jnp.int32), T, self.margin)

        dp_mean = dp_sum / T
        dn_mean = dn_sum / T
        loss = loss_sum / T if self.reduction == "mean" else loss_sum
        return loss, dp_mean, dn_mean


# ----------------------------------------------------------------------------
# Pure-JAX reference (faithful port of the torch forward, for the check)
# ----------------------------------------------------------------------------
def _reference(embeddings, triplets, margin, reduction):
    emb = jnp.asarray(embeddings, jnp.float32)
    trip = jnp.asarray(triplets, jnp.int32)
    a, p, n = emb[trip[:, 0]], emb[trip[:, 1]], emb[trip[:, 2]]

    def nrm(x):
        return x / jnp.maximum(jnp.linalg.norm(x, axis=1, keepdims=True), _EPS)

    a, p, n = nrm(a), nrm(p), nrm(n)
    d_p = jnp.sum((a - p) ** 2, axis=1)
    d_n = jnp.sum((a - n) ** 2, axis=1)
    losses = jnp.maximum(d_p - d_n + margin, 0.0)
    loss = losses.mean() if reduction == "mean" else losses.sum()
    return loss, d_p.mean(), d_n.mean()


if __name__ == "__main__":
    key = jax.random.PRNGKey(0)
    N, D = 16, 32
    embeddings = jax.random.normal(key, (N, D), dtype=jnp.float32)
    target = np.repeat(np.arange(4, dtype=np.int32), 4)   # 4 classes x 4 -> 576 triplets

    selector = AllTripletSelector()

    for reduction in ("mean", "sum"):
        criterion = OnlineTripletLossPallas(selector, margin=0.5, reduction=reduction)
        loss, d_p, d_n = criterion(embeddings, target)
        jax.block_until_ready((loss, d_p, d_n))

        triplets = selector.get_triplets(np.asarray(embeddings), target)
        ref = _reference(embeddings, triplets, 0.5, reduction)
        # Loose tolerance: the MXU's f32 matmul pass count is implementation
        # defined; all elementwise / reduction math in the kernel is exact f32.
        for got, want in zip((loss, d_p, d_n), ref):
            np.testing.assert_allclose(np.asarray(got), np.asarray(want),
                                       rtol=1e-2, atol=1e-2)

    # TODO(synk): triplet mining itself stays host-side (data-dependent, ragged
    # index enumeration), as in the PyTorch module's external selector object.
    print("KERNEL_OK")
</pallas_src>

<mosaic_0001>
module attributes {stable_mosaic.version = 11 : i64} {
  func.func @_gram_kernel(%arg0: i32, %arg1: memref<128x128xf32, #tpu.memory_space<vmem>>, %arg2: memref<128x128xf32, #tpu.memory_space<vmem>>) attributes {dimension_semantics = [#tpu.dimension_semantics<arbitrary>], iteration_bounds = array<i64: 1>, scalar_prefetch = 0 : i64, scratch_operands = 0 : i64, tpu.core_type = #tpu.core_type<tc>, window_params = [{pipeline_mode = #tpu.pipeline_mode<synchronous>, transform_indices = @transform_0, window_bounds = array<i64: 128, 128>}, {pipeline_mode = #tpu.pipeline_mode<synchronous>, transform_indices = @transform_1, window_bounds = array<i64: 128, 128>}]} {
    %c0 = arith.constant 0 : index
    %c0_0 = arith.constant 0 : index
    %0 = vector.load %arg1[%c0, %c0_0] : memref<128x128xf32, #tpu.memory_space<vmem>>, vector<128x128xf32>
    %1 = arith.mulf %0, %0 : vector<128x128xf32>
    %cst = arith.constant dense<0.000000e+00> : vector<128xf32>
    %2 = vector.multi_reduction <add>, %1, %cst [1] : vector<128x128xf32> to vector<128xf32>
    %3 = vector.shape_cast %2 : vector<128xf32> to vector<128x1xf32>
    %cst_1 = arith.constant 1.000000e-24 : f32
    %4 = vector.broadcast %cst_1 : f32 to vector<128x1xf32>
    %5 = arith.maximumf %3, %4 : vector<128x1xf32>
    %6 = math.rsqrt %5 : vector<128x1xf32>
    %7 = vector.broadcast %6 : vector<128x1xf32> to vector<128x128xf32>
    %8 = arith.mulf %0, %7 : vector<128x128xf32>
    %9 = tpu.transpose %8, [1, 0] : vector<128x128xf32> -> vector<128x128xf32>
    %cst_2 = arith.constant dense<0.000000e+00> : vector<128x128xf32>
    %10 = tpu.matmul %8, %9, %cst_2 {dimension_numbers = #tpu.dot_dimension_numbers<[1], [0], [0], [1], [0, 0, 1, 1], [], []>} : vector<128x128xf32>, vector<128x128xf32>, vector<128x128xf32> -> vector<128x128xf32>
    %c0_3 = arith.constant 0 : index
    %c0_4 = arith.constant 0 : index
    %11 = vector.load %arg2[%c0_3, %c0_4] : memref<128x128xf32, #tpu.memory_space<vmem>>, vector<128x128xf32>
    tpu.vector_store %arg2[%c0_3, %c0_4], %10 {strides = array<i32>} : memref<128x128xf32, #tpu.memory_space<vmem>>, vector<128x128xf32>,
    return
  }
  func.func @transform_0(%arg0: i32) -> (i32, i32) {
    %c0_i32 = arith.constant 0 : i32
    %c0_i32_0 = arith.constant 0 : i32
    %c0_i32_1 = arith.constant 0 : i32
    return %c0_i32, %c0_i32_0 : i32, i32
  }
  func.func @transform_1(%arg0: i32) -> (i32, i32) {
    %c0_i32 = arith.constant 0 : i32
    %c0_i32_0 = arith.constant 0 : i32
    %c0_i32_1 = arith.constant 0 : i32
    return %c0_i32, %c0_i32_0 : i32, i32
  }
}

</mosaic_0001>

<bundles_post_ra>
// kernel: tpu_custom_call.1
= control target key start
LH: loop header
LB: loop body
LE: loop exit
PB: predicated region body
PF: predicated region fallthrough
CT: control target
= control target key end

     0   :  { %6 = vsyncpa [#allocation3], 0  ;;  %s675_s0 = inlined_call_operand.hbm [shape: f32[128,128], index: 0, kind: input, shape index: {}]   ;;  %s676_s1 = inlined_call_operand.hbm [shape: f32[128,128], index: 1, kind: output, shape index: {}]  }
   0x1   :  { %7 = vsyncpa [#allocation4], 0  ;;  %s513_s6 = smov [#allocation2]  }
   0x2   :  { %s13_s7 = sshll.u32 %s513_s6, 4  ;;  %s14_s7 = int_to_ptr.vmem [resolvable:$true] %s13_s7 }
   0x3   :  { %s477_s8 = scalar_lea.vmem %s14_s7, 2048  ;;  %p482_p1 = scmp.lt.s32.totalorder %s14_s7, %s14_s7 }
   0x4   :  { %p478_p0 = scmp.ne.s32.totalorder %s14_s7, %s477_s8  ;;  %p483_p2 = scmp.lt.s32.totalorder %s477_s8, %s477_s8 }
   0x6   :  { %p484_p3 = por %p483_p2, %p482_p1 }
   0x8   :  { %p485_p4 = pnand %p484_p3, %p478_p0 }
   0xa   :  { %488 = shalt.err (!%p485_p4)
}
   0xb   :  { %s514_s9 = smov 128   ;;  %s515_s10 = smov 8  }
   0xc   :  { %19 = dma.hbm_to_vmem [thread:$0]  %s675_s0, 2048, %s14_s7, [#allocation3], %s514_s9, %s514_s9, %s515_s10  }
   0xd   :  { %509 = dma.done.wait [#allocation3], 2048  }
   0xe   :  { %510 = vsyncadd [#allocation3], 4294965248  ;;  %v533_v0 = vld [vmem:[#allocation2 + $0x78] sm:$0xff]  ;;  %v535_v1 = vld [vmem:[#allocation2 + $0x70] sm:$0xff]  ;;  %s516_s0 = smov [#allocation5]  }
   0xf   :  { %v537_v2 = vld [vmem:[#allocation2 + $0x68] sm:$0xff]  ;;  %v54_v3 = vmul.f32 %v533_v0, %v533_v0  ;;  %v543_v5 = vld [vmem:[#allocation2 + $0x60] sm:$0xff]  ;;  %v53_v6 = vmul.f32 %v535_v1, %v535_v1  ;;  %v549_v8 = vld [vmem:[#allocation2 + $0x58] sm:$0xff]  ;;  %s301_s13 = sshll.u32 %s516_s0, 4  ;;  %s302_s13 = int_to_ptr.vmem [resolvable:$true] %s301_s13 }
  0x10   :  { %v52_v4 = vmul.f32 %v537_v2, %v537_v2  ;;  %v51_v7 = vmul.f32 %v543_v5, %v543_v5  ;;  %v551_v9 = vld [vmem:[#allocation2 + $0x50] sm:$0xff]  ;;  %v50_v10 = vmul.f32 %v549_v8, %v549_v8  ;;  %v557_v12 = vld [vmem:[#allocation2 + $0x48] sm:$0xff]  ;;  %v559_v13 = vld [vmem:[#allocation2 + $0x40] sm:$0xff]  ;;  %s489_s14 = scalar_lea.vmem %s302_s13, 2048  ;;  %p494_p6 = scmp.lt.s32.totalorder %s302_s13, %s302_s13 }
  0x11   :  { %85 = vadd.xlane.f32.xlu0 %v54_v3  ;;  %v49_v11 = vmul.f32 %v551_v9, %v551_v9  ;;  %v48_v14 = vmul.f32 %v557_v12, %v557_v12  ;;  %v47_v15 = vmul.f32 %v559_v13, %v559_v13  ;;  %v565_v16 = vld [vmem:[#allocation2 + $0x38] sm:$0xff]  ;;  %v567_v17 = vld [vmem:[#allocation2 + $0x30] sm:$0xff]  ;;  %v573_v20 = vld [vmem:[#allocation2 + $0x28] sm:$0xff]  ;;  %p490_p5 = scmp.ne.s32.totalorder %s302_s13, %s489_s14  ;;  %p495_p7 = scmp.lt.s32.totalorder %s489_s14, %s489_s14 }
  0x12   :  { %81 = vadd.xlane.f32.xlu1 %v52_v4  ;;  %v46_v18 = vmul.f32 %v565_v16, %v565_v16  ;;  %v45_v19 = vmul.f32 %v567_v17, %v567_v17  ;;  %v575_v21 = vld [vmem:[#allocation2 + $0x20] sm:$0xff]  ;;  %v44_v22 = vmul.f32 %v573_v20, %v573_v20  ;;  %v581_v24 = vld [vmem:[#allocation2 + $0x18] sm:$0xff]  ;;  %v583_v25 = vld [vmem:[#allocation2 + $0x10] sm:$0xff] }
  0x13   :  { %v43_v23 = vmul.f32 %v575_v21, %v575_v21  ;;  %v42_v26 = vmul.f32 %v581_v24, %v581_v24  ;;  %v41_v27 = vmul.f32 %v583_v25, %v583_v25  ;;  %v589_v28 = vld [vmem:[#allocation2 + $0x8] sm:$0xff]  ;;  %v591_v29 = vld [vmem:[#allocation2] sm:$0xff]  ;;  %p496_p8 = por %p495_p7, %p494_p6 }
  0x14   :  { %v40_v30 = vmul.f32 %v589_v28, %v589_v28  ;;  %v39_v31 = vmul.f32 %v591_v29, %v591_v29 }
  0x15   :  { %83 = vadd.xlane.f32.xlu0 %v53_v6  ;;  %p497_p9 = pnand %p496_p8, %p490_p5 }
  0x16   :  { %79 = vadd.xlane.f32.xlu1 %v51_v7 }
  0x19   :  { %77 = vadd.xlane.f32.xlu0 %v50_v10 }
  0x1a   :  { %75 = vadd.xlane.f32.xlu1 %v49_v11 }
  0x1d   :  { %73 = vadd.xlane.f32.xlu0 %v48_v14 }
  0x1e   :  { %71 = vadd.xlane.f32.xlu1 %v47_v15 }
  0x21   :  { %69 = vadd.xlane.f32.xlu0 %v46_v18 }
  0x22   :  { %67 = vadd.xlane.f32.xlu1 %v45_v19 }
  0x25   :  { %65 = vadd.xlane.f32.xlu0 %v44_v22 }
  0x26   :  { %63 = vadd.xlane.f32.xlu1 %v43_v23 }
  0x29   :  { %61 = vadd.xlane.f32.xlu0 %v42_v26 }
  0x2a   :  { %59 = vadd.xlane.f32.xlu1 %v41_v27 }
  0x2d   :  { %57 = vadd.xlane.f32.xlu0 %v40_v30 }
  0x2e   :  { %55 = vadd.xlane.f32.xlu1 %v39_v31 }
  0x9a   :  { %v86_v32 = vpop.xlane.xlu0 %85 }
  0x9b   :  { %v82_v33 = vpop.xlane.xlu1 %81  ;;  %v102_v34 = vmax.f32 %v86_v32, 1e-24 }
  0x9c   :  { %v100_v35 = vmax.f32 %v82_v33, 1e-24 }
  0x9d   :  { %437 = vrsqrt.f32 %v102_v34 }
  0x9e   :  { %v84_v36 = vpop.xlane.xlu0 %83  ;;  %439 = vrsqrt.f32 %v100_v35 }
  0x9f   :  { %v80_v37 = vpop.xlane.xlu1 %79  ;;  %v101_v38 = vmax.f32 %v84_v36, 1e-24 }
  0xa0   :  { %v99_v39 = vmax.f32 %v80_v37, 1e-24 }
  0xa1   :  { %441 = vrsqrt.f32 %v101_v38 }
  0xa2   :  { %v78_v40 = vpop.xlane.xlu0 %77  ;;  %443 = vrsqrt.f32 %v99_v39 }
  0xa3   :  { %v76_v41 = vpop.xlane.xlu1 %75  ;;  %v98_v42 = vmax.f32 %v78_v40, 1e-24 }
  0xa4   :  { %v97_v44 = vmax.f32 %v76_v41, 1e-24 }
  0xa5   :  { %445 = vrsqrt.f32 %v98_v42 }
  0xa6   :  { %v74_v46 = vpop.xlane.xlu0 %73 }
  0xa7   :  { %v72_v43 = vpop.xlane.xlu1 %71  ;;  %v96_v50 = vmax.f32 %v74_v46, 1e-24 }
  0xa8   :  { %v95_v45 = vmax.f32 %v72_v43, 1e-24 }
  0xaa   :  { %v438_v47 = vpop.eup %437  ;;  %447 = vrsqrt.f32 %v95_v45  ;;  %v70_v57 = vpop.xlane.xlu0 %69 }
  0xab   :  { %v68_v48 = vpop.xlane.xlu1 %67  ;;  %v598_v49 = vmul.f32 %v438_v47, %v533_v0  ;;  %449 = vrsqrt.f32 %v97_v44  ;;  %v440_v51 = vpop.eup %439  ;;  %v94_v60 = vmax.f32 %v70_v57, 1e-24 }
  0xac   :  { %451 = vrsqrt.f32 %v96_v50  ;;  %v608_v55 = vmul.f32 %v440_v51, %v537_v2 }
  0xad   :  { %345 = vmatprep.subr.mxu0 %v598_v49  ;;  %401 = vmatprep.subr.mxu1 %v598_v49  ;;  %453 = vrsqrt.f32 %v94_v60 }
  0xae   :  { %v442_v52 = vpop.eup %441  ;;  %346 = vmatpush3.xpose.msra.mxu0 %v598_v49  ;;  %417 = vmatpush3.xpose.msra.mxu1 %v598_v49  ;;  %v66_v4 = vpop.xlane.xlu0 %65 }
  0xaf   :  { %v64_v53 = vpop.xlane.xlu1 %63  ;;  %v605_v54 = vmul.f32 %v442_v52, %v535_v1  ;;  %v444_v56 = vpop.eup %443  ;;  %v93_v1 = vmax.f32 %v68_v48, 1e-24  ;;  %v92_v7 = vmax.f32 %v66_v4, 1e-24 }
  0xb0   :  { %v617_v59 = vmul.f32 %v444_v56, %v543_v5  ;;  %v91_v11 = vmax.f32 %v64_v53, 1e-24 }
  0xb1   :  { %347 = vmatprep.subr.mxu0 %v605_v54  ;;  %402 = vmatprep.subr.mxu1 %v605_v54 }
  0xb2   :  { %348 = vmatpush3.xpose.msra.mxu0 %v605_v54  ;;  %418 = vmatpush3.xpose.msra.mxu1 %v605_v54  ;;  %v446_v61 = vpop.eup %445 }
  0xb3   :  { %v60_v58 = vpop.xlane.xlu1 %59  ;;  %349 = vmatprep.subr.mxu0 %v608_v55  ;;  %403 = vmatprep.subr.mxu1 %v608_v55  ;;  %v624_v0 = vmul.f32 %v446_v61, %v549_v8 }
  0xb4   :  { %v89_v18 = vmax.f32 %v60_v58, 1e-24 }
  0xb6   :  { %350 = vmatpush3.xpose.msra.mxu0 %v608_v55  ;;  %419 = vmatpush3.xpose.msra.mxu1 %v608_v55 }
  0xb7   :  { %v56_v62 = vpop.xlane.xlu1 %55  ;;  %v448_v63 = vpop.eup %447  ;;  %351 = vmatprep.subr.mxu0 %v617_v59  ;;  %404 = vmatprep.subr.mxu1 %v617_v59 }
  0xb8   :  { %v87_v2 = vmax.f32 %v56_v62, 1e-24  ;;  %v450_v3 = vpop.eup %449  ;;  %v127_v5 = vmul.f32 %v448_v63, %v559_v13  ;;  %v62_v13 = vpop.xlane.xlu0 %61 }
  0xb9   :  { %v632_v6 = vmul.f32 %v450_v3, %v551_v9  ;;  %v452_v8 = vpop.eup %451  ;;  %v90_v9 = vmax.f32 %v62_v13, 1e-24 }
  0xba   :  { %352 = vmatpush3.xpose.msra.mxu0 %v617_v59  ;;  %420 = vmatpush3.xpose.msra.mxu1 %v617_v59  ;;  %455 = vrsqrt.f32 %v87_v2  ;;  %v639_v10 = vmul.f32 %v452_v8, %v557_v12  ;;  %v454_v14 = vpop.eup %453 }
  0xbb   :  { %353 = vmatprep.subr.mxu0 %v624_v0  ;;  %405 = vmatprep.subr.mxu1 %v624_v0  ;;  %457 = vrsqrt.f32 %v93_v1  ;;  %v648_v12 = vmul.f32 %v454_v14, %v565_v16 }
  0xbc   :  { %389 = vmatprep.mubr.f32.mxu1 %v127_v5  ;;  %459 = vrsqrt.f32 %v92_v7  ;;  %v58_v22 = vpop.xlane.xlu0 %57 }
  0xbd   :  { %461 = vrsqrt.f32 %v91_v11  ;;  %v88_v27 = vmax.f32 %v58_v22, 1e-24 }
  0xbe   :  { %354 = vmatpush3.xpose.msra.mxu0 %v624_v0  ;;  %421 = vmatpush3.xpose.msra.mxu1 %v624_v0  ;;  %463 = vrsqrt.f32 %v90_v9 }
  0xbf   :  { %355 = vmatprep.subr.mxu0 %v632_v6  ;;  %406 = vmatprep.subr.mxu1 %v632_v6  ;;  %465 = vrsqrt.f32 %v89_v18 }
  0xc0   :  { %467 = vrsqrt.f32 %v88_v27 }
  0xc2   :  { %356 = vmatpush3.xpose.msra.mxu0 %v632_v6  ;;  %422 = vmatpush3.xpose.msra.mxu1 %v632_v6 }
  0xc3   :  { %357 = vmatprep.subr.mxu0 %v639_v10  ;;  %407 = vmatprep.subr.mxu1 %v639_v10 }
  0xc6   :  { %358 = vmatpush3.xpose.msra.mxu0 %v639_v10  ;;  %423 = vmatpush3.xpose.msra.mxu1 %v639_v10 }
  0xc7   :  { %v456_v15 = vpop.eup %455  ;;  %359 = vmatprep.subr.mxu0 %v127_v5  ;;  %408 = vmatprep.subr.mxu1 %v127_v5 }
  0xc8   :  { %v458_v19 = vpop.eup %457  ;;  %v119_v23 = vmul.f32 %v456_v15, %v591_v29 }
  0xc9   :  { %v125_v26 = vmul.f32 %v458_v19, %v567_v17  ;;  %v460_v30 = vpop.eup %459 }
  0xca   :  { %360 = vmatpush3.xpose.msra.mxu0 %v127_v5  ;;  %424 = vmatpush3.xpose.msra.mxu1 %v127_v5  ;;  %v124_v16 = vmul.f32 %v460_v30, %v573_v20  ;;  %v462_v29 = vpop.eup %461 }
  0xcb   :  { %361 = vmatprep.subr.mxu0 %v648_v12  ;;  %409 = vmatprep.subr.mxu1 %v648_v12  ;;  %v123_v31 = vmul.f32 %v462_v29, %v575_v21  ;;  %v464_v17 = vpop.eup %463 }
  0xcc   :  { %377 = vmatprep.mubr.f32.mxu0 %v119_v23  ;;  %v122_v32 = vmul.f32 %v464_v17, %v581_v24  ;;  %v466_v33 = vpop.eup %465 }
  0xcd   :  { %v121_v20 = vmul.f32 %v466_v33, %v583_v25  ;;  %v468_v34 = vpop.eup %467 }
  0xce   :  { %362 = vmatpush3.xpose.msra.mxu0 %v648_v12  ;;  %425 = vmatpush3.xpose.msra.mxu1 %v648_v12  ;;  %v120_v21 = vmul.f32 %v468_v34, %v589_v28 }
  0xcf   :  { %363 = vmatprep.subr.mxu0 %v125_v26  ;;  %410 = vmatprep.subr.mxu1 %v125_v26 }
  0xd2   :  { %364 = vmatpush3.xpose.msra.mxu0 %v125_v26  ;;  %426 = vmatpush3.xpose.msra.mxu1 %v125_v26 }
  0xd3   :  { %365 = vmatprep.subr.mxu0 %v124_v16  ;;  %411 = vmatprep.subr.mxu1 %v124_v16 }
  0xd6   :  { %366 = vmatpush3.xpose.msra.mxu0 %v124_v16  ;;  %427 = vmatpush3.xpose.msra.mxu1 %v124_v16 }
  0xd7   :  { %367 = vmatprep.subr.mxu0 %v123_v31  ;;  %412 = vmatprep.subr.mxu1 %v123_v31 }
  0xda   :  { %368 = vmatpush3.xpose.msra.mxu0 %v123_v31  ;;  %428 = vmatpush3.xpose.msra.mxu1 %v123_v31 }
  0xdb   :  { %369 = vmatprep.subr.mxu0 %v122_v32  ;;  %413 = vmatprep.subr.mxu1 %v122_v32 }
  0xde   :  { %370 = vmatpush3.xpose.msra.mxu0 %v122_v32  ;;  %429 = vmatpush3.xpose.msra.mxu1 %v122_v32 }
  0xdf   :  { %371 = vmatprep.subr.mxu0 %v121_v20  ;;  %414 = vmatprep.subr.mxu1 %v121_v20 }
  0xe2   :  { %372 = vmatpush3.xpose.msra.mxu0 %v121_v20  ;;  %430 = vmatpush3.xpose.msra.mxu1 %v121_v20 }
  0xe3   :  { %373 = vmatprep.subr.mxu0 %v120_v21  ;;  %415 = vmatprep.subr.mxu1 %v120_v21 }
  0xe6   :  { %374 = vmatpush3.xpose.msra.mxu0 %v120_v21  ;;  %431 = vmatpush3.xpose.msra.mxu1 %v120_v21 }
  0xe7   :  { %375 = vmatprep.subr.mxu0 %v119_v23  ;;  %416 = vmatprep.subr.mxu1 %v119_v23 }
  0xea   :  { %376 = vmatpush3.xpose.msra.mxu0 %v119_v23  ;;  %432 = vmatpush3.xpose.msra.mxu1 %v119_v23 }
  0xed   :  { %378 = vmatmul.mubr.f32.vlgmr.msra.gmra.mxu0 %v120_v21  ;;  %390 = vmatmul.mubr.f32.vlgmr.msra.gmra.mxu1 %v639_v10 }
  0xee   :  { %380 = vmatprep.mubr.f32.mxu0 %v121_v20  ;;  %392 = vmatprep.mubr.f32.mxu1 %v632_v6 }
  0xf1   :  { %381 = vmatmul.mubr.f32.gmra.mxu0 %v122_v32  ;;  %393 = vmatmul.mubr.f32.gmra.mxu1 %v624_v0 }
  0xf2   :  { %383 = vmatprep.mubr.f32.mxu0 %v123_v31  ;;  %395 = vmatprep.mubr.f32.mxu1 %v617_v59 }
  0xf5   :  { %384 = vmatmul.mubr.f32.gmra.mxu0 %v124_v16  ;;  %396 = vmatmul.mubr.f32.gmra.mxu1 %v608_v55 }
  0xf6   :  { %386 = vmatprep.mubr.f32.mxu0 %v125_v26  ;;  %398 = vmatprep.mubr.f32.mxu1 %v605_v54 }
  0xf9   :  { %387 = vmatmul.mubr.f32.gmra.mxu0 %v648_v12  ;;  %399 = vmatmul.mubr.f32.gmra.mxu1 %v598_v49 }
 0x1ad   :  { %v379_v24 = vpop.f32.mrf.mxu0  ;;  %v391_v25 = vpop.f32.mrf.mxu1 }
 0x1ae   :  { %281 = vst [vmem:[#allocation5 + $0x8] sm:$0xff] %v379_v24  ;;  %289 = vst [vmem:[#allocation5 + $0x48] sm:$0xff] %v391_v25 }
 0x1af   :  { %v201_v28 = vpop.f32.mrf.mxu0  ;;  %v241_v35 = vpop.f32.mrf.mxu1 }
 0x1b0   :  { %280 = vst [vmem:[#allocation5] sm:$0xff] %v201_v28  ;;  %288 = vst [vmem:[#allocation5 + $0x40] sm:$0xff] %v241_v35 }
 0x1b1   :  { %v382_v36 = vpop.f32.mrf.mxu0  ;;  %v394_v37 = vpop.f32.mrf.mxu1 }
 0x1b2   :  { %283 = vst [vmem:[#allocation5 + $0x18] sm:$0xff] %v382_v36  ;;  %291 = vst [vmem:[#allocation5 + $0x58] sm:$0xff] %v394_v37 }
 0x1b3   :  { %v211_v38 = vpop.f32.mrf.mxu0  ;;  %v251_v39 = vpop.f32.mrf.mxu1 }
 0x1b4   :  { %282 = vst [vmem:[#allocation5 + $0x10] sm:$0xff] %v211_v38  ;;  %290 = vst [vmem:[#allocation5 + $0x50] sm:$0xff] %v251_v39 }
 0x1b5   :  { %v385_v40 = vpop.f32.mrf.mxu0  ;;  %v397_v41 = vpop.f32.mrf.mxu1 }
 0x1b6   :  { %285 = vst [vmem:[#allocation5 + $0x28] sm:$0xff] %v385_v40  ;;  %293 = vst [vmem:[#allocation5 + $0x68] sm:$0xff] %v397_v41 }
 0x1b7   :  { %v221_v42 = vpop.f32.mrf.mxu0  ;;  %v261_v43 = vpop.f32.mrf.mxu1 }
 0x1b8   :  { %284 = vst [vmem:[#allocation5 + $0x20] sm:$0xff] %v221_v42  ;;  %292 = vst [vmem:[#allocation5 + $0x60] sm:$0xff] %v261_v43 }
 0x1b9   :  { %v388_v44 = vpop.f32.mrf.mxu0  ;;  %v400_v45 = vpop.f32.mrf.mxu1 }
 0x1ba   :  { %287 = vst [vmem:[#allocation5 + $0x38] sm:$0xff] %v388_v44  ;;  %295 = vst [vmem:[#allocation5 + $0x78] sm:$0xff] %v400_v45 }
 0x1bb   :  { %v231_v46 = vpop.f32.mrf.mxu0  ;;  %v271_v47 = vpop.f32.mrf.mxu1 }
 0x1bc   :  { %286 = vst [vmem:[#allocation5 + $0x30] sm:$0xff] %v231_v46  ;;  %294 = vst [vmem:[#allocation5 + $0x70] sm:$0xff] %v271_v47 }
 0x1bd   :  { %500 = shalt.err (!%p497_p9)
}
 0x1be   :  { %307 = dma.vmem_to_hbm [thread:$0]  %s302_s13, 2048, %s676_s1, [#allocation4], %s514_s9, %s514_s9, %s515_s10  }
 0x1bf   :  { %511 = dma.done.wait [#allocation4], 2048  }
 0x1c0   :  { %512 = vsyncadd [#allocation4], 4294965248 }
 0x1c1   :  { %311 = vsyncpa [#allocation3], 1 }
 0x1c2   :  { %312 = vsyncpa [#allocation4], 1 }

</bundles_post_ra>
